<compile_context>
chip_gen: v6e
topology: v6e:2x2x1
jax: 0.10.0
libtpu: 0.0.40
codegen_flags: <defaults>
</compile_context>

<pallas_src>
import jax
import jax.numpy as jnp
from jax import lax
from jax.experimental import pallas as pl
from jax.experimental.pallas import tpu as pltpu

LANE = 128


# ---------------------------------------------------------------------------
# Fused kernel: buggy attention mask + masked-mean reduction over S (tiled,
# accumulated in VMEM) + BERT tanh pooler + dropout(eval) + classifier Linear.
# ---------------------------------------------------------------------------
def bert_classifier_kernel(vl_ref,            # SMEM (B,) int32 (scalar prefetch)
                           emb_ref,           # (B_T, S_T, H) bf16
                           wp_ref, bp_ref,    # (H, H) bf16, (1, H) f32
                           wc_ref, bc_ref,    # (H, C_PAD) f32, (1, C_PAD) f32
                           out_ref,           # (B_T, C_PAD) f32
                           ctx_acc,           # VMEM (B_T, 1, H) f32
                           den_acc,           # VMEM (B_T, 1) f32
                           cls_sc):           # VMEM (B_T, H) f32
    bi = pl.program_id(0)
    si = pl.program_id(1)
    b_tile, s_tile, _ = emb_ref.shape

    @pl.when(si == 0)
    def _init():
        ctx_acc[...] = jnp.zeros_like(ctx_acc)
        den_acc[...] = jnp.zeros_like(den_acc)
        # CLS token (sequence position 0) lives in the first S-block only.
        cls_sc[...] = emb_ref[...][:, 0, :].astype(jnp.float32)

    # Fused gen_attention_mask, reproducing the reference bug: only *global*
    # batch row 0 gets ones (for cols < valid_length[0]); all other rows are 0.
    row = lax.broadcasted_iota(jnp.int32, (b_tile, s_tile), 0) + bi * b_tile
    col = lax.broadcasted_iota(jnp.int32, (b_tile, s_tile), 1) + si * s_tile
    mask = jnp.where((row == 0) & (col < vl_ref[0]),
                     jnp.float32(1.0), jnp.float32(0.0))        # (B_T, S_T) f32

    emb = emb_ref[...]                                          # (B_T,S_T,H) bf16
    # Weighted sum over S as a batched (1,S)x(S,H) contraction -> MXU,
    # accumulated in f32 across S blocks.
    ctx_acc[...] += jnp.einsum(
        "bqs,bsh->bqh", mask.astype(emb.dtype)[:, None, :], emb,
        preferred_element_type=jnp.float32)
    den_acc[...] += jnp.sum(mask, axis=-1, keepdims=True)

    @pl.when(si == pl.num_programs(1) - 1)
    def _finalize():
        denom = jnp.maximum(den_acc[...], 1.0)                  # (B_T, 1)
        ctx = ctx_acc[...][:, 0, :] * pl.reciprocal(denom, approx=True)
        pooled = jnp.tanh(
            jnp.dot((cls_sc[...] + ctx).astype(jnp.bfloat16), wp_ref[...],
                    preferred_element_type=jnp.float32)
            + bp_ref[...])                                      # (B_T, H) f32
        # dropout(dr_rate) in eval mode is the identity.
        # TODO(synk): training-mode dropout would use pltpu.prng_seed +
        # pltpu.prng_random_bits here.
        out_ref[...] = (jnp.dot(pooled, wc_ref[...],
                                preferred_element_type=jnp.float32)
                        + bc_ref[...])                          # (B_T, C_PAD)


# ---------------------------------------------------------------------------
# Wrapper
# ---------------------------------------------------------------------------
def _round_up(x, m):
    return (x + m - 1) // m * m


def bert_classifier_forward(params, token_ids, valid_length, segment_ids,
                            *, b_tile=None, s_tile=None):
    B, S = token_ids.shape
    H = params["w_pool"].shape[0]
    C = params["w_cls"].shape[1]
    c_pad = _round_up(max(C, LANE), LANE)   # lane-dense output width

    # --- glue: embedding gathers for the synthetic bert stand-in ------------
    # TODO(synk): the real external `bert` encoder is stood in by
    # token+segment+position embeddings feeding the in-kernel pooler.
    emb = (jnp.take(params["tok_emb"], token_ids, axis=0)
           + jnp.take(params["seg_emb"], segment_ids, axis=0)
           + params["pos_emb"][None, :S, :])
    emb = emb.astype(jnp.bfloat16)          # halve HBM bytes on the hot stream

    # --- tiling: B parallel (megacore), S reduction last ---------------------
    if b_tile is None:
        b_tile = B if B <= 8 else 8
    if s_tile is None:
        s_tile = S if S <= 256 else 256     # keeps double-buffered tile << 64MiB
    b_pad = _round_up(B, b_tile)
    s_pad = _round_up(S, s_tile)
    if (b_pad, s_pad) != (B, S):
        emb = jnp.pad(emb, ((0, b_pad - B), (0, s_pad - S), (0, 0)))

    # Lane-dense classifier weights/bias (slice the logits back below).
    w_cls = jnp.pad(params["w_cls"].astype(jnp.float32), ((0, 0), (0, c_pad - C)))
    b_cls = jnp.pad(params["b_cls"].astype(jnp.float32), ((0, 0), (0, c_pad - C)))
    w_pool = params["w_pool"].astype(jnp.bfloat16)
    b_pool = params["b_pool"].astype(jnp.float32)

    grid = (b_pad // b_tile, s_pad // s_tile)

    cost = pl.CostEstimate(
        flops=2 * b_pad * s_pad * H + 2 * b_pad * H * H + 2 * b_pad * H * c_pad,
        transcendentals=b_pad * H,
        bytes_accessed=(b_pad * s_pad * H * 2 + H * H * 2 + H * 4
                        + H * c_pad * 4 + c_pad * 4 + b_pad * c_pad * 4),
    )

    out_padded = pl.pallas_call(
        bert_classifier_kernel,
        out_shape=jax.ShapeDtypeStruct((b_pad, c_pad), jnp.float32),
        grid_spec=pltpu.PrefetchScalarGridSpec(
            num_scalar_prefetch=1,
            grid=grid,
            in_specs=[
                pl.BlockSpec((b_tile, s_tile, H), lambda b, s, vl: (b, s, 0)),
                pl.BlockSpec((H, H), lambda b, s, vl: (0, 0)),
                pl.BlockSpec((1, H), lambda b, s, vl: (0, 0)),
                pl.BlockSpec((H, c_pad), lambda b, s, vl: (0, 0)),
                pl.BlockSpec((1, c_pad), lambda b, s, vl: (0, 0)),
            ],
            out_specs=pl.BlockSpec((b_tile, c_pad), lambda b, s, vl: (b, 0)),
            scratch_shapes=[
                pltpu.VMEM((b_tile, 1, H), jnp.float32),   # ctx accumulator
                pltpu.VMEM((b_tile, 1), jnp.float32),      # mask-count accum
                pltpu.VMEM((b_tile, H), jnp.float32),      # CLS token cache
            ],
        ),
        compiler_params=pltpu.CompilerParams(
            dimension_semantics=("parallel", "arbitrary"),
            vmem_limit_bytes=48 * 1024 * 1024,   # stays inside v7x's 64 MiB VMEM
        ),
        cost_estimate=cost,
    )(valid_length.astype(jnp.int32), emb, w_pool, b_pool, w_cls, b_cls)

    return out_padded[:B, :C]


# ---------------------------------------------------------------------------
# Params + pure-JAX reference
# ---------------------------------------------------------------------------
def init_params(key, vocab=100, seq=8, hidden=32, num_classes=2):
    k = jax.random.split(key, 6)
    scale = 0.02
    return {
        "tok_emb": scale * jax.random.normal(k[0], (vocab, hidden), jnp.float32),
        "seg_emb": scale * jax.random.normal(k[1], (2, hidden), jnp.float32),
        "pos_emb": scale * jax.random.normal(k[2], (seq, hidden), jnp.float32),
        "w_pool":  scale * jax.random.normal(k[3], (hidden, hidden), jnp.float32),
        "b_pool":  jnp.zeros((1, hidden), jnp.float32),
        # nn.Linear(hidden, num_classes): weight (C, H) stored transposed (H, C)
        "w_cls":   scale * jax.random.normal(k[4], (hidden, num_classes),
                                             jnp.float32),
        "b_cls":   jnp.zeros((1, num_classes), jnp.float32),
    }


def reference_forward(params, token_ids, valid_length, segment_ids):
    B, S = token_ids.shape
    emb = (jnp.take(params["tok_emb"], token_ids, axis=0)
           + jnp.take(params["seg_emb"], segment_ids, axis=0)
           + params["pos_emb"][None, :S, :])
    # Buggy gen_attention_mask: only batch row 0 is ever filled.
    mask = jnp.zeros((B, S), jnp.float32)
    mask = mask.at[0].set((jnp.arange(S) < valid_length[0]).astype(jnp.float32))
    denom = jnp.maximum(jnp.sum(mask, axis=-1, keepdims=True), 1.0)
    ctx = jnp.sum(emb * mask[:, :, None], axis=1) / denom
    cls = emb[:, 0, :]
    pooled = jnp.tanh((cls + ctx) @ params["w_pool"] + params["b_pool"])
    return pooled @ params["w_cls"] + params["b_cls"]


if __name__ == "__main__":
    B, S, H, C, VOCAB = 2, 8, 32, 2, 100

    key = jax.random.PRNGKey(0)
    kp, kt, ks = jax.random.split(key, 3)

    params = init_params(kp, vocab=VOCAB, seq=S, hidden=H, num_classes=C)
    token_ids = jax.random.randint(kt, (B, S), 0, VOCAB, dtype=jnp.int32)
    segment_ids = jax.random.randint(ks, (B, S), 0, 2, dtype=jnp.int32)
    valid_length = jnp.array([5, 7], dtype=jnp.int32)

    logits = bert_classifier_forward(params, token_ids, valid_length,
                                     segment_ids)
    jax.block_until_ready(logits)
    assert logits.shape == (B, C) and logits.dtype == jnp.float32

    ref = reference_forward(params, token_ids, valid_length, segment_ids)
    assert jnp.allclose(logits, ref, atol=2e-2, rtol=2e-2), (logits, ref)
    print("KERNEL_OK")
</pallas_src>

<mosaic_0001>
module attributes {stable_mosaic.version = 11 : i64} {
  func.func @bert_classifier_kernel(%arg0: i32, %arg1: i32, %arg2: memref<2xi32, #tpu.memory_space<smem>>, %arg3: memref<2x8x32xbf16, #tpu.memory_space<vmem>>, %arg4: memref<32x32xbf16, #tpu.memory_space<vmem>>, %arg5: memref<1x32xf32, #tpu.memory_space<vmem>>, %arg6: memref<32x128xf32, #tpu.memory_space<vmem>>, %arg7: memref<1x128xf32, #tpu.memory_space<vmem>>, %arg8: memref<2x128xf32, #tpu.memory_space<vmem>>, %arg9: memref<2x1x32xf32, #tpu.memory_space<vmem>>, %arg10: memref<2x1xf32, #tpu.memory_space<vmem>>, %arg11: memref<2x32xf32, #tpu.memory_space<vmem>>) attributes {dimension_semantics = [#tpu.dimension_semantics<parallel>, #tpu.dimension_semantics<arbitrary>], iteration_bounds = array<i64: 1, 1>, scalar_prefetch = 1 : i64, scratch_operands = 3 : i64, tpu.core_type = #tpu.core_type<tc>, window_params = [{transform_indices = @transform_0, window_bounds = array<i64: 2, 8, 32>}, {pipeline_mode = #tpu.pipeline_mode<synchronous>, transform_indices = @transform_1, window_bounds = array<i64: 32, 32>}, {pipeline_mode = #tpu.pipeline_mode<synchronous>, transform_indices = @transform_2, window_bounds = array<i64: 1, 32>}, {pipeline_mode = #tpu.pipeline_mode<synchronous>, transform_indices = @transform_3, window_bounds = array<i64: 32, 128>}, {pipeline_mode = #tpu.pipeline_mode<synchronous>, transform_indices = @transform_4, window_bounds = array<i64: 1, 128>}, {transform_indices = @transform_5, window_bounds = array<i64: 2, 128>}]} {
    %c0_i32 = arith.constant 0 : i32
    %0 = arith.cmpi eq, %arg1, %c0_i32 : i32
    %1 = arith.extui %0 : i1 to i32
    %c0_i32_0 = arith.constant 0 : i32
    %2 = arith.cmpi ne, %1, %c0_i32_0 : i32
    scf.if %2 {
      %cst_20 = arith.constant 0.000000e+00 : f32
      %35 = vector.broadcast %cst_20 : f32 to vector<2x1x32xf32>
      %c0_21 = arith.constant 0 : index
      %c0_22 = arith.constant 0 : index
      %c0_23 = arith.constant 0 : index
      %36 = vector.load %arg9[%c0_21, %c0_22, %c0_23] : memref<2x1x32xf32, #tpu.memory_space<vmem>>, vector<2x1x32xf32>
      tpu.vector_store %arg9[%c0_21, %c0_22, %c0_23], %35 {strides = array<i32>} : memref<2x1x32xf32, #tpu.memory_space<vmem>>, vector<2x1x32xf32>,
      %cst_24 = arith.constant 0.000000e+00 : f32
      %37 = vector.broadcast %cst_24 : f32 to vector<2x1xf32>
      %c0_25 = arith.constant 0 : index
      %c0_26 = arith.constant 0 : index
      %38 = vector.load %arg10[%c0_25, %c0_26] : memref<2x1xf32, #tpu.memory_space<vmem>>, vector<2x1xf32>
      tpu.vector_store %arg10[%c0_25, %c0_26], %37 {strides = array<i32>} : memref<2x1xf32, #tpu.memory_space<vmem>>, vector<2x1xf32>,
      %c0_27 = arith.constant 0 : index
      %c0_28 = arith.constant 0 : index
      %c0_29 = arith.constant 0 : index
      %39 = vector.load %arg3[%c0_27, %c0_28, %c0_29] : memref<2x8x32xbf16, #tpu.memory_space<vmem>>, vector<2x8x32xbf16>
      %40 = vector.extract_strided_slice %39 {offsets = [0, 0, 0], sizes = [2, 1, 32], strides = [1, 1, 1]} : vector<2x8x32xbf16> to vector<2x1x32xbf16>
      %41 = vector.shape_cast %40 : vector<2x1x32xbf16> to vector<2x32xbf16>
      %42 = arith.extf %41 : vector<2x32xbf16> to vector<2x32xf32>
      %c0_30 = arith.constant 0 : index
      %c0_31 = arith.constant 0 : index
      %43 = vector.load %arg11[%c0_30, %c0_31] : memref<2x32xf32, #tpu.memory_space<vmem>>, vector<2x32xf32>
      tpu.vector_store %arg11[%c0_30, %c0_31], %42 {strides = array<i32>} : memref<2x32xf32, #tpu.memory_space<vmem>>, vector<2x32xf32>,
    } else {
    }
    %3 = tpu.iota {dimensions = array<i32: 0>} : vector<2x8xi32>
    %c2_i32 = arith.constant 2 : i32
    %4 = arith.muli %arg0, %c2_i32 : i32
    %5 = vector.broadcast %4 : i32 to vector<2x8xi32>
    %6 = arith.addi %3, %5 : vector<2x8xi32>
    %7 = tpu.iota {dimensions = array<i32: 1>} : vector<2x8xi32>
    %c8_i32 = arith.constant 8 : i32
    %8 = arith.muli %arg1, %c8_i32 : i32
    %9 = vector.broadcast %8 : i32 to vector<2x8xi32>
    %10 = arith.addi %7, %9 : vector<2x8xi32>
    %c0_i32_1 = arith.constant 0 : i32
    %11 = vector.broadcast %c0_i32_1 : i32 to vector<2x8xi32>
    %12 = arith.cmpi eq, %6, %11 : vector<2x8xi32>
    %c0 = arith.constant 0 : index
    %13 = memref.load %arg2[%c0] : memref<2xi32, #tpu.memory_space<smem>>
    %14 = vector.broadcast %13 : i32 to vector<2x8xi32>
    %15 = arith.cmpi slt, %10, %14 : vector<2x8xi32>
    %16 = arith.andi %12, %15 : vector<2x8xi1>
    %cst = arith.constant 1.000000e+00 : f32
    %cst_2 = arith.constant 0.000000e+00 : f32
    %17 = vector.broadcast %cst : f32 to vector<2x8xf32>
    %18 = vector.broadcast %cst_2 : f32 to vector<2x8xf32>
    %19 = arith.select %16, %17, %18 : vector<2x8xi1>, vector<2x8xf32>
    %c0_3 = arith.constant 0 : index
    %c0_4 = arith.constant 0 : index
    %c0_5 = arith.constant 0 : index
    %20 = vector.load %arg3[%c0_3, %c0_4, %c0_5] : memref<2x8x32xbf16, #tpu.memory_space<vmem>>, vector<2x8x32xbf16>
    %c0_6 = arith.constant 0 : index
    %c0_7 = arith.constant 0 : index
    %c0_8 = arith.constant 0 : index
    %21 = vector.load %arg9[%c0_6, %c0_7, %c0_8] : memref<2x1x32xf32, #tpu.memory_space<vmem>>, vector<2x1x32xf32>
    %22 = arith.truncf %19 : vector<2x8xf32> to vector<2x8xbf16>
    %23 = vector.shape_cast %22 : vector<2x8xbf16> to vector<2x1x8xbf16>
    "tpu.trace_start"() <{level = 10 : i32, message = "bqs,bsh->bqh"}> : () -> ()
    %cst_9 = arith.constant dense<0.000000e+00> : vector<2x1x32xf32>
    %24 = tpu.matmul %23, %20, %cst_9 {dimension_numbers = #tpu.dot_dimension_numbers<[2], [1], [1], [2], [0, 0, 0, 1, 1, 2], [0], [0]>} : vector<2x1x8xbf16>, vector<2x8x32xbf16>, vector<2x1x32xf32> -> vector<2x1x32xf32>
    "tpu.trace_stop"() : () -> ()
    %25 = arith.addf %21, %24 : vector<2x1x32xf32>
    %c0_10 = arith.constant 0 : index
    %c0_11 = arith.constant 0 : index
    %c0_12 = arith.constant 0 : index
    %26 = vector.load %arg9[%c0_10, %c0_11, %c0_12] : memref<2x1x32xf32, #tpu.memory_space<vmem>>, vector<2x1x32xf32>
    tpu.vector_store %arg9[%c0_10, %c0_11, %c0_12], %25 {strides = array<i32>} : memref<2x1x32xf32, #tpu.memory_space<vmem>>, vector<2x1x32xf32>,
    %c0_13 = arith.constant 0 : index
    %c0_14 = arith.constant 0 : index
    %27 = vector.load %arg10[%c0_13, %c0_14] : memref<2x1xf32, #tpu.memory_space<vmem>>, vector<2x1xf32>
    %cst_15 = arith.constant dense<0.000000e+00> : vector<2xf32>
    %28 = vector.multi_reduction <add>, %19, %cst_15 [1] : vector<2x8xf32> to vector<2xf32>
    %29 = vector.shape_cast %28 : vector<2xf32> to vector<2x1xf32>
    %30 = arith.addf %27, %29 : vector<2x1xf32>
    %c0_16 = arith.constant 0 : index
    %c0_17 = arith.constant 0 : index
    %31 = vector.load %arg10[%c0_16, %c0_17] : memref<2x1xf32, #tpu.memory_space<vmem>>, vector<2x1xf32>
    tpu.vector_store %arg10[%c0_16, %c0_17], %30 {strides = array<i32>} : memref<2x1xf32, #tpu.memory_space<vmem>>, vector<2x1xf32>,
    %c0_i32_18 = arith.constant 0 : i32
    %32 = arith.cmpi eq, %arg1, %c0_i32_18 : i32
    %33 = arith.extui %32 : i1 to i32
    %c0_i32_19 = arith.constant 0 : i32
    %34 = arith.cmpi ne, %33, %c0_i32_19 : i32
    scf.if %34 {
      %c0_20 = arith.constant 0 : index
      %c0_21 = arith.constant 0 : index
      %35 = vector.load %arg10[%c0_20, %c0_21] : memref<2x1xf32, #tpu.memory_space<vmem>>, vector<2x1xf32>
      %cst_22 = arith.constant 1.000000e+00 : f32
      %36 = vector.broadcast %cst_22 : f32 to vector<2x1xf32>
      %37 = arith.maximumf %35, %36 : vector<2x1xf32>
      %c0_23 = arith.constant 0 : index
      %c0_24 = arith.constant 0 : index
      %c0_25 = arith.constant 0 : index
      %38 = vector.load %arg9[%c0_23, %c0_24, %c0_25] : memref<2x1x32xf32, #tpu.memory_space<vmem>>, vector<2x1x32xf32>
      %39 = vector.shape_cast %38 : vector<2x1x32xf32> to vector<2x32xf32>
      %40 = tpu.reciprocal %37 {approx = true} : vector<2x1xf32> -> vector<2x1xf32>
      %41 = vector.broadcast %40 : vector<2x1xf32> to vector<2x32xf32>
      %42 = arith.mulf %39, %41 : vector<2x32xf32>
      %c0_26 = arith.constant 0 : index
      %c0_27 = arith.constant 0 : index
      %43 = vector.load %arg11[%c0_26, %c0_27] : memref<2x32xf32, #tpu.memory_space<vmem>>, vector<2x32xf32>
      %44 = arith.addf %43, %42 : vector<2x32xf32>
      %45 = arith.truncf %44 : vector<2x32xf32> to vector<2x32xbf16>
      %c0_28 = arith.constant 0 : index
      %c0_29 = arith.constant 0 : index
      %46 = vector.load %arg4[%c0_28, %c0_29] : memref<32x32xbf16, #tpu.memory_space<vmem>>, vector<32x32xbf16>
      %cst_30 = arith.constant dense<0.000000e+00> : vector<2x32xf32>
      %47 = tpu.matmul %45, %46, %cst_30 {dimension_numbers = #tpu.dot_dimension_numbers<[1], [0], [0], [1], [0, 0, 1, 1], [], []>} : vector<2x32xbf16>, vector<32x32xbf16>, vector<2x32xf32> -> vector<2x32xf32>
      %c0_31 = arith.constant 0 : index
      %c0_32 = arith.constant 0 : index
      %48 = vector.load %arg5[%c0_31, %c0_32] : memref<1x32xf32, #tpu.memory_space<vmem>>, vector<1x32xf32>
      %49 = vector.broadcast %48 : vector<1x32xf32> to vector<2x32xf32>
      %50 = arith.addf %47, %49 : vector<2x32xf32>
      %51 = math.tanh %50 : vector<2x32xf32>
      %c0_33 = arith.constant 0 : index
      %c0_34 = arith.constant 0 : index
      %52 = vector.load %arg6[%c0_33, %c0_34] : memref<32x128xf32, #tpu.memory_space<vmem>>, vector<32x128xf32>
      %cst_35 = arith.constant dense<0.000000e+00> : vector<2x128xf32>
      %53 = tpu.matmul %51, %52, %cst_35 {dimension_numbers = #tpu.dot_dimension_numbers<[1], [0], [0], [1], [0, 0, 1, 1], [], []>} : vector<2x32xf32>, vector<32x128xf32>, vector<2x128xf32> -> vector<2x128xf32>
      %c0_36 = arith.constant 0 : index
      %c0_37 = arith.constant 0 : index
      %54 = vector.load %arg7[%c0_36, %c0_37] : memref<1x128xf32, #tpu.memory_space<vmem>>, vector<1x128xf32>
      %55 = vector.broadcast %54 : vector<1x128xf32> to vector<2x128xf32>
      %56 = arith.addf %53, %55 : vector<2x128xf32>
      %c0_38 = arith.constant 0 : index
      %c0_39 = arith.constant 0 : index
      %57 = vector.load %arg8[%c0_38, %c0_39] : memref<2x128xf32, #tpu.memory_space<vmem>>, vector<2x128xf32>
      tpu.vector_store %arg8[%c0_38, %c0_39], %56 {strides = array<i32>} : memref<2x128xf32, #tpu.memory_space<vmem>>, vector<2x128xf32>,
    } else {
    }
    return
  }
  func.func @transform_0(%arg0: i32, %arg1: i32, %arg2: memref<2xi32, #tpu.memory_space<smem>>) -> (i32, i32, i32) {
    %c0_i32 = arith.constant 0 : i32
    %c0_i32_0 = arith.constant 0 : i32
    return %arg0, %arg1, %c0_i32 : i32, i32, i32
  }
  func.func @transform_1(%arg0: i32, %arg1: i32, %arg2: memref<2xi32, #tpu.memory_space<smem>>) -> (i32, i32) {
    %c0_i32 = arith.constant 0 : i32
    %c0_i32_0 = arith.constant 0 : i32
    %c0_i32_1 = arith.constant 0 : i32
    return %c0_i32, %c0_i32_0 : i32, i32
  }
  func.func @transform_2(%arg0: i32, %arg1: i32, %arg2: memref<2xi32, #tpu.memory_space<smem>>) -> (i32, i32) {
    %c0_i32 = arith.constant 0 : i32
    %c0_i32_0 = arith.constant 0 : i32
    %c0_i32_1 = arith.constant 0 : i32
    return %c0_i32, %c0_i32_0 : i32, i32
  }
  func.func @transform_3(%arg0: i32, %arg1: i32, %arg2: memref<2xi32, #tpu.memory_space<smem>>) -> (i32, i32) {
    %c0_i32 = arith.constant 0 : i32
    %c0_i32_0 = arith.constant 0 : i32
    %c0_i32_1 = arith.constant 0 : i32
    return %c0_i32, %c0_i32_0 : i32, i32
  }
  func.func @transform_4(%arg0: i32, %arg1: i32, %arg2: memref<2xi32, #tpu.memory_space<smem>>) -> (i32, i32) {
    %c0_i32 = arith.constant 0 : i32
    %c0_i32_0 = arith.constant 0 : i32
    %c0_i32_1 = arith.constant 0 : i32
    return %c0_i32, %c0_i32_0 : i32, i32
  }
  func.func @transform_5(%arg0: i32, %arg1: i32, %arg2: memref<2xi32, #tpu.memory_space<smem>>) -> (i32, i32) {
    %c0_i32 = arith.constant 0 : i32
    %c0_i32_0 = arith.constant 0 : i32
    return %arg0, %c0_i32 : i32, i32
  }
}

</mosaic_0001>

<bundles_post_ra>
// kernel: tpu_custom_call.1
= control target key start
LH: loop header
LB: loop body
LE: loop exit
PB: predicated region body
PF: predicated region fallthrough
CT: control target
= control target key end

     0   :  { %s630_s21 = smov [#allocation6]   ;;  %s739_s0 = inlined_call_operand.hbm [shape: s32[2], index: 0, kind: input, shape index: {}]   ;;  %s740_s1 = inlined_call_operand.hbm [shape: bf16[2,8,32], index: 1, kind: input, shape index: {}]   ;;  %s741_s2 = inlined_call_operand.hbm [shape: bf16[32,32], index: 2, kind: input, shape index: {}]   ;;  %s742_s3 = inlined_call_operand.vmem [shape: f32[1,32], index: 3, kind: input, shape index: {}]   ;;  %s743_s4 = inlined_call_operand.hbm [shape: f32[32,128], index: 4, kind: input, shape index: {}]   ;;  %s744_s5 = inlined_call_operand.vmem [shape: f32[1,128], index: 5, kind: input, shape index: {}]   ;;  %s745_s6 = inlined_call_operand.hbm [shape: f32[2,128], index: 6, kind: output, shape index: {}]  }
   0x1   :  { %12 = dma.hbm_to_smem %s739_s0, 16, %s630_s21, [#allocation5] }
   0x2   :  { %622 = dma.done.wait [#allocation5], 16 }
   0x3   :  { %623 = vsyncadd [#allocation5], 4294967280 }
   0x4   :  { %14 = sfence }
   0x5   :  { %15 = vsyncpa [#allocation8], 0 }
   0x6   :  { %16 = vsyncpa [#allocation11], 0 }
   0x7   :  { %17 = vsyncpa [#allocation9], 0  ;;  %s631_s24 = smov [#allocation10]   ;;  %s632_s26 = smov [#allocation7]  }
   0x8   :  { %s35_s25 = sshll.u32 %s631_s24, 4  ;;  %s23_s27 = sshll.u32 %s632_s26, 4  ;;  %s36_s25 = int_to_ptr.vmem [resolvable:$true] %s35_s25  ;;  %s24_s27 = int_to_ptr.vmem [resolvable:$true] %s23_s27 }
   0x9   :  { %s550_s28 = scalar_lea.vmem %s36_s25, 256  ;;  %p555_p1 = scmp.lt.s32.totalorder %s36_s25, %s36_s25 }
   0xa   :  { %p551_p0 = scmp.ne.s32.totalorder %s36_s25, %s550_s28  ;;  %p556_p2 = scmp.lt.s32.totalorder %s550_s28, %s550_s28 }
   0xc   :  { %p557_p3 = por %p556_p2, %p555_p1 }
   0xe   :  { %p558_p4 = pnand %p557_p3, %p551_p0 }
  0x10   :  { %561 = shalt.err (!%p558_p4)
}
  0x11   :  { %s633_s0 = smov 64   ;;  %s634_s29 = smov 4  }
  0x12   :  { %41 = dma.hbm_to_vmem [thread:$0]  %s741_s2, 256, %s36_s25, [#allocation11], %s633_s0, %s633_s0, %s634_s29  }
  0x13   :  { %s570_s8 = scalar_lea.vmem %s24_s27, 128  ;;  %p575_p6 = scmp.lt.s32.totalorder %s24_s27, %s24_s27 }
  0x14   :  { %p571_p5 = scmp.ne.s32.totalorder %s24_s27, %s570_s8  ;;  %p576_p7 = scmp.lt.s32.totalorder %s570_s8, %s570_s8 }
  0x16   :  { %p577_p8 = por %p576_p7, %p575_p6 }
  0x18   :  { %p578_p9 = pnand %p577_p8, %p571_p5 }
  0x1a   :  { %581 = shalt.err (!%p578_p9)
}
  0x1b   :  { %29 = dma.hbm_to_vmem [thread:$0]  %s740_s1, 128, %s24_s27, [#allocation8], %s633_s0, %s633_s0, %s634_s29  }
  0x1c   :  { %s635_s11 = smov [#allocation12]  }
  0x1d   :  { %s49_s12 = sshll.u32 %s635_s11, 4  ;;  %s50_s12 = int_to_ptr.vmem [resolvable:$true] %s49_s12 }
  0x1e   :  { %s590_s13 = scalar_lea.vmem %s50_s12, 512  ;;  %p595_p11 = scmp.lt.s32.totalorder %s50_s12, %s50_s12 }
  0x1f   :  { %p591_p10 = scmp.ne.s32.totalorder %s50_s12, %s590_s13  ;;  %p596_p12 = scmp.lt.s32.totalorder %s590_s13, %s590_s13 }
  0x21   :  { %p597_p13 = por %p596_p12, %p595_p11 }
  0x23   :  { %p598_p0 = pnand %p597_p13, %p591_p10 }
  0x25   :  { %601 = shalt.err (!%p598_p0)
}
  0x26   :  { %s636_s2 = smov 128   ;;  %s637_s14 = smov 8  }
  0x27   :  { %55 = dma.hbm_to_vmem [thread:$0]  %s743_s4, 512, %s50_s12, [#allocation11], %s636_s2, %s636_s2, %s637_s14  }
  0x28   :  { %624 = dma.done.wait [#allocation8], 128  }
  0x29   :  { %625 = vsyncadd [#allocation8], 4294967168 }
  0x2a   :  { %626 = dma.done.wait [#allocation11], 768  }
  0x2b   :  { %627 = vsyncadd [#allocation11], 4294966528  ;;  %v89_v0 = vlaneseq  ;;  %s100_s1 = sld [smem:[#allocation6]]  ;;  %v638_v1 = vmov 1966171168   ;;  %v639_v3 = vmov 0.0  }
  0x2c   :  { %v112_v2 = vunpack.c.l.s4 %v638_v1  ;;  %483 = vmatprep.subr.bf16.mxu0 %v639_v3  ;;  %489 = vmatprep.subr.bf16.mxu1 %v639_v3  ;;  %vm640_vm0 = vmmov 0   ;;  %vm75_vm1 = vcmask 1024   ;;  %vm136_vm2 = vcmask 1043456   ;;  %v105_v8 = vld [vmem:[#allocation7] sm:$0xf]  ;;  %v528_v36 = vld [vmem:[#allocation10 + $0x8] sm:$0xff]  }
  0x2d   :  { %v692_v4 = vshrl.u32 %v89_v0, 7  ;;  %485 = vmatprep.mubr.msk.bf16.mxu0 %vm640_vm0, %v639_v3  ;;  %491 = vmatprep.mubr.msk.bf16.mxu1 %vm640_vm0, %v639_v3  ;;  %76 = vst.msk [vmem:[#allocation3] sm:$0x3] %vm75_vm1, %v639_v3  ;;  %v95_v5 = vand.u32 127, %v89_v0  ;;  %vm237_vm4 = vcmask 58368   ;;  %v138_v10 = vsel %vm136_vm2, %v105_v8, 0 }
  0x2e   :  { %v113_v6 = vunpack.c.0.s8 %v112_v2  ;;  %v106_v9 = vld [vmem:[#allocation7 + $0x4] sm:$0xf]  ;;  %484 = vmatpush3.bf16.msra.mxu0 %v138_v10  ;;  %vm132_vm7 = vcmask 64512   ;;  %v641_v24 = vmov 0   ;;  %vm72_vm8 = vcmask 253952   ;;  %v529_v37 = vld [vmem:[#allocation10] sm:$0xff]  }
  0x2f   :  { %vm99_vm3 = vcmp.eq.s32.totalorder %v692_v4, 0  ;;  %v189_v11 = vsel %vm136_vm2, %v106_v9, 0  ;;  %495 = vmatprep.subr.bf16.mxu0 %v639_v3  ;;  %v130_v18 = vsub.s32 0, %v692_v4  ;;  %527 = vset.pattern.permute.xlu0 %v641_v24  ;;  %73 = vst.msk [vmem:[#allocation2] sm:$0x1] %vm72_vm8, %v639_v3  ;;  %v468_v25 = vld [vmem:[#allocation7] sm:$0xff]  }
  0x30   :  { %v702_v12 = vsub.s32 %v113_v6, %v692_v4  ;;  %490 = vmatpush3.bf16.msra.mxu1 %v189_v11  ;;  %74 = vst.msk [vmem:[#allocation2 + $0x1] sm:$0x1] %vm72_vm8, %v639_v3  ;;  %v469_v26 = vunpack.c.l.bf16 %v468_v25  ;;  %v470_v27 = vunpack.c.h.bf16 %v468_v25  ;;  %vm84_vm9 = vcmask 1041409   ;;  %v360_v0 = vld [vmem:[#allocation12 + $0x18] sm:$0xff]  ;;  %v359_v1 = vld [vmem:[#allocation12 + $0x10] sm:$0xff]  ;;  %v358_v2 = vld [vmem:[#allocation12 + $0x8] sm:$0xff] }
  0x31   :  { %v101_v7 = vstv %s100_s1  ;;  %503 = vmatprep.subr.mxu1 %v639_v3  ;;  %vm87_vm10 = vcmask 254976   ;;  %v262_v50 = vsub.s32 1, %v692_v4  ;;  %vm312_vm11 = vcmask 261120   ;;  %v357_v4 = vld [vmem:[#allocation12] sm:$0xff]  ;;  %s642_s20 = smov [#allocation13]  }
  0x32   :  { %vm102_vm5 = vcmp.lt.s32.totalorder %v95_v5, %v101_v7  ;;  %v83_v28 = vrot.slane %v470_v27, 7  ;;  %v461_v5 = vld [vmem:[%s742_s3] ss:$0 sm:$0xff]  ;;  %s448_s21 = sshll.u32 %s642_s20, 4  ;;  %s449_s21 = int_to_ptr.vmem [resolvable:$true] %s448_s21 }
  0x33   :  { %vm103_vm6 = vmand %vm99_vm3, %vm102_vm5  ;;  %s602_s3 = scalar_lea.vmem %s449_s21, 32  ;;  %p607_p2 = scmp.lt.s32.totalorder %s449_s21, %s449_s21 }
  0x34   :  { %v104_v13 = vsel %vm103_vm6, 1.0, %v639_v3  ;;  %v85_v29 = vsel %vm84_vm9, %v83_v28, %v469_v26  ;;  %v236_v30 = vld [vmem:[#allocation3] sm:$0x3]  ;;  %p603_p1 = scmp.ne.s32.totalorder %s449_s21, %s602_s3  ;;  %p608_p3 = scmp.lt.s32.totalorder %s602_s3, %s602_s3 }
  0x35   :  { %v238_v14 = vsel %vm237_vm4, %v104_v13, 0.0  ;;  %v109_v15 = vpack.c.bf16 %v104_v13, %v104_v13  ;;  %88 = vst.msk [vmem:[#allocation4] sm:$0x3] %vm87_vm10, %v85_v29 }
  0x36   :  { %239 = vadd.xlane.f32.xlu0 %v238_v14  ;;  %v107_v38 = vld [vmem:[#allocation2] sm:$0x1]  ;;  %p609_p4 = por %p608_p3, %p607_p2 }
  0x37   :  { %v117_v16 = vrot.slane %v109_v15, %v702_v12  ;;  %v108_v40 = vld [vmem:[#allocation2 + $0x1] sm:$0x1] }
  0x38   :  { %p610_p5 = pnand %p609_p4, %p603_p1 }
  0x39   :  { %v124_v17 = vrot.slane %v117_v16, %v702_v12 }
  0x3b   :  { %v126_v19 = vunpack.i.h.s16 %v124_v17  ;;  %v458_v20 = vpack.i.b16 %v124_v17, %v124_v17 }
  0x3c   :  { %v268_v60 = vld [vmem:[#allocation4] sm:$0x3] }
  0x3d   :  { %v180_v21 = vpack.i.b16 %v126_v19, %v126_v19  ;;  %v131_v22 = vrot.slane %v458_v20, %v130_v18 }
  0x3f   :  { %486 = vmatmul.mubr.msk.bf16.vlgmr.msra.gmra.mxu0 %vm132_vm7, %v131_v22  ;;  %v184_v23 = vrot.slane %v180_v21, %v130_v18 }
  0x40   :  { %499 = vmatprep.mubr.msk.bf16.mxu0 %vm640_vm0, %v639_v3  ;;  %496 = vmatpush3.bf16.msra.mxu0 %v528_v36 }
  0x41   :  { %492 = vmatmul.mubr.msk.bf16.vlgmr.msra.gmra.mxu1 %vm132_vm7, %v184_v23  ;;  %497 = vmatprep.subr.bf16.mxu0 %v639_v3 }
  0x42   :  { %511 = vmatprep.mubr.msk.f32.mxu1 %vm640_vm0, %v639_v3  ;;  %504 = vmatpush3.msra.mxu1 %v360_v0 }
  0x43   :  { %505 = vmatprep.subr.mxu1 %v639_v3 }
  0x44   :  { %498 = vmatpush3.bf16.msra.mxu0 %v529_v37  ;;  %506 = vmatpush3.msra.mxu1 %v359_v1 }
  0x45   :  { %507 = vmatprep.subr.mxu1 %v639_v3 }
  0x46   :  { %508 = vmatpush3.msra.mxu1 %v358_v2 }
  0x47   :  { %509 = vmatprep.subr.mxu1 %v639_v3 }
  0x48   :  { %510 = vmatpush3.msra.mxu1 %v357_v4 }
  0xbf   :  { %v240_v31 = vpop.xlane.xlu0 %239 }
  0xc0   :  { %v241_v32 = vadd.f32 %v240_v31, %v236_v30 }
  0xc2   :  { %243 = vst.msk [vmem:[#allocation3] sm:$0x3] %vm75_vm1, %v241_v32 }
  0xc9   :  { %v247_v33 = vld [vmem:[#allocation3] sm:$0x3] }
  0xca   :  { %v248_v34 = vmax.f32 %v247_v33, 1.0 }
  0xcc   :  { %530 = vrcp.f32 %v248_v34 }
  0xd9   :  { %v531_v35 = vpop.eup %530 }
  0xda   :  { %254 = vperm.xlu0 %527, %v531_v35  }
  0xff   :  { %v174_v39 = vpop.f32.mrf.mxu0 }
 0x100   :  { %v231_v41 = vadd.f32 %v174_v39, %v107_v38 }
 0x101   :  { %v225_v42 = vpop.f32.mrf.mxu1  ;;  %v487_v43 = vpop.f32.mrf.mxu0 }
 0x102   :  { %234 = vst.msk [vmem:[#allocation2] sm:$0x1] %vm72_vm8, %v231_v41  ;;  %v232_v44 = vadd.f32 %v225_v42, %v108_v40 }
 0x103   :  { %v493_v45 = vpop.f32.mrf.mxu1  ;;  %v177_v46 = vpop.f32.mrf.mxu0 }
 0x104   :  { %235 = vst.msk [vmem:[#allocation2 + $0x1] sm:$0x1] %vm72_vm8, %v232_v44 }
 0x105   :  { %v228_v47 = vpop.f32.mrf.mxu1  ;;  %v488_v48 = vpop.f32.mrf.mxu0 }
 0x107   :  { %v494_v49 = vpop.f32.mrf.mxu1 }
 0x109   :  { %v249_v52 = vld [vmem:[#allocation2] sm:$0x1] }
 0x10b   :  { %v250_v53 = vld [vmem:[#allocation2 + $0x1] sm:$0x1] }
 0x155   :  { %v255_v51 = vpop.permute.xlu0 %254 }
 0x156   :  { %v259_v54 = vrot.slane %v255_v51, %v130_v18  ;;  %v263_v55 = vrot.slane %v255_v51, %v262_v50 }
 0x158   :  { %v266_v56 = vmul.f32 %v259_v54, %v249_v52  ;;  %v267_v57 = vmul.f32 %v263_v55, %v250_v53 }
 0x15a   :  { %v271_v58 = vcombine.low %v266_v56, %v267_v57 }
 0x15c   :  { %v278_v59 = vrot.slane %v271_v58, %v702_v12 }
 0x15e   :  { %v285_v61 = vrot.slane %v278_v59, %v702_v12  ;;  %v465_v12 = vld [vmem:[%s744_s5] ss:$0 sm:$0xff] }
 0x160   :  { %v287_v62 = vadd.f32 %v285_v61, %v268_v60 }
 0x162   :  { %v288_v63 = vpack.c.bf16 %v287_v62, %v287_v62 }
 0x164   :  { %500 = vmatmul.mubr.msk.bf16.vlgmr.msra.gmra.mxu0 %vm312_vm11, %v288_v63 }
 0x224   :  { %v350_v6 = vpop.f32.mrf.mxu0 }
 0x225   :  { %v351_v7 = vadd.f32 %v461_v5, %v350_v6 }
 0x226   :  { %v501_v8 = vpop.f32.mrf.mxu0 }
 0x227   :  { %532 = vtanh.f32 %v351_v7 }
 0x228   :  { %v353_v9 = vpop.f32.mrf.mxu0 }
 0x22a   :  { %v502_v10 = vpop.f32.mrf.mxu0 }
 0x234   :  { %v533_v11 = vpop.eup %532 }
 0x235   :  { %512 = vmatmul.mubr.msk.f32.vlgmr.msra.gmra.mxu1 %vm312_vm11, %v533_v11 }
 0x2f5   :  { %v437_v3 = vpop.f32.mrf.mxu1 }
 0x2f6   :  { %v438_v13 = vadd.f32 %v465_v12, %v437_v3 }
 0x2f7   :  { %v513_v14 = vpop.f32.mrf.mxu1 }
 0x2f8   :  { %441 = vst [vmem:[#allocation13] sm:$0x3] %v438_v13 }
 0x2f9   :  { %613 = shalt.err (!%p610_p5)
}
 0x2fa   :  { %451 = dma.vmem_to_hbm [thread:$0]  %s449_s21, 32, %s745_s6, [#allocation9]  }
 0x2fb   :  { %628 = dma.done.wait [#allocation9], 32  }
 0x2fc   :  { %629 = vsyncadd [#allocation9], 4294967264 }
 0x2fd   :  { %455 = vsyncpa [#allocation8], 1 }
 0x2fe   :  { %456 = vsyncpa [#allocation11], 1 }
 0x2ff   :  { %457 = vsyncpa [#allocation9], 1 }

</bundles_post_ra>
